<compile_context>
chip_gen: v5e
topology: v5e:2x2
jax: 0.10.0
libtpu: 0.0.40
codegen_flags: <defaults>
</compile_context>

<pallas_src>
import jax
import jax.numpy as jnp
from jax.experimental import pallas as pl
from jax.experimental.pallas import tpu as pltpu

batch_size = 10
embedding_dim = 30
hidden_size = 100
order = 5
vocab_size = 64  # small synthetic vocab

_CTX = order - 1        # context positions (4)
_H_PAD = 128            # hidden padded to lane width
_V_PAD = 128            # vocab padded to lane width
_B_ALIGN = 16           # batch padded to a full bf16 sublane group


def nnlm_kernel(xf_ref, wf_ref, b_ref, w2_ref, out_ref):
    """xf: (Bp, ctx) flat one-hot column ids; wf: (ctx*V, Hp) bf16 folded emb@W1;
    b: (2, 128) f32 [row0 = fc1 bias (pad lanes 0), row1 = fc2 bias (pad lanes -1e30)];
    w2: (Hp, Vp) bf16; out: (Bp, Vp) f32 softmax probs."""
    B, ctx = xf_ref.shape
    CV = wf_ref.shape[0]                         # ctx * vocab

    # ---- embedding gather + fc1 fused as ONE K=256 MXU matmul ----------------
    # Flat one-hot (B, ctx*V): column xf[b, p] (already offset by p*V) is 1.
    col = jax.lax.broadcasted_iota(jnp.int32, (B, CV), 1)
    onehot = (col == xf_ref[:, 0:1]).astype(jnp.float32)
    for p in range(1, ctx):                      # static unroll (3 more compares)
        onehot = onehot + (col == xf_ref[:, p:p + 1]).astype(jnp.float32)

    h = jnp.tanh(
        jnp.dot(onehot.astype(jnp.bfloat16), wf_ref[...],
                preferred_element_type=jnp.float32) + b_ref[0:1, :])        # (B, Hp) f32

    # ---- fc2 (padded vocab lanes pick up -1e30 from the bias row) ------------
    logits = jnp.dot(h.astype(jnp.bfloat16), w2_ref[...],
                     preferred_element_type=jnp.float32) + b_ref[1:2, :]    # (B, Vp) f32

    # ---- softmax: padded lanes carry -1e30 -> exp underflows to exactly 0 ----
    m = jnp.max(logits, axis=1, keepdims=True)
    e = jnp.exp(logits - m)
    s = jnp.sum(e, axis=1, keepdims=True)
    out_ref[...] = e * pl.reciprocal(s, approx=False)   # exact: rows sum to 1


def prepare_params(emb, w1, b1, w2, b2):
    """Input-independent parameter prep: fold emb into fc1, pad to lane width,
    bake the pad-lane softmax mask into the fc2 bias, cast MXU operands to bf16."""
    V, E = emb.shape
    H = w1.shape[1]
    ctx = w1.shape[0] // E
    # W_fold[p*V:(p+1)*V, :] = emb @ W1[p*E:(p+1)*E, :]
    w_fold = jnp.concatenate(
        [emb @ w1[p * E:(p + 1) * E, :] for p in range(ctx)], axis=0)       # (ctx*V, H)
    w_fold_p = jnp.zeros((ctx * V, _H_PAD), jnp.float32).at[:, :H].set(w_fold)

    # Combined bias (f32): row 0 = fc1 bias (hidden pad lanes 0 -> tanh(0)=0,
    # zero w2 rows keep them inert); row 1 = fc2 bias with padded vocab lanes
    # pre-set to -1e30 so the kernel needs no in-kernel mask.  Must stay f32.
    bias = jnp.zeros((2, _V_PAD), jnp.float32)
    bias = bias.at[0, :H].set(b1.reshape(-1))
    bias = bias.at[1, :].set(-1e30)
    bias = bias.at[1, :V].set(b2.reshape(-1))

    w2_p = jnp.zeros((_H_PAD, _V_PAD), jnp.float32).at[:H, :V].set(w2)
    return (w_fold_p.astype(jnp.bfloat16), bias, w2_p.astype(jnp.bfloat16))


def nnlm_forward(x, params):
    w_fold_bf, bias, w2_bf = params
    B, ctx = x.shape
    V = w_fold_bf.shape[0] // ctx

    # Precompute flat one-hot column indices (x[:,p] + p*V) and pad batch to a
    # sublane-friendly size; padded rows get valid indices and are sliced away.
    # NOTE: token ids are assumed to lie in [0, V) (no in-kernel bounds check).
    Bp = max(_B_ALIGN, ((B + _B_ALIGN - 1) // _B_ALIGN) * _B_ALIGN)
    offs = (jnp.arange(ctx, dtype=jnp.int32) * V)[None, :]
    flat_x = x.astype(jnp.int32) + offs
    flat_x_p = jnp.broadcast_to(offs, (Bp, ctx)).at[:B, :].set(flat_x)

    vmem = pl.BlockSpec(memory_space=pltpu.MemorySpace.VMEM)
    probs_padded = pl.pallas_call(
        nnlm_kernel,
        out_shape=jax.ShapeDtypeStruct((Bp, _V_PAD), jnp.float32),
        in_specs=[vmem] * 4,
        out_specs=vmem,
    )(flat_x_p, w_fold_bf, bias, w2_bf)
    return probs_padded[:B, :V]


if __name__ == "__main__":
    key = jax.random.PRNGKey(0)
    k_emb, k_w1, k_b1, k_w2, k_b2, k_x = jax.random.split(key, 6)

    in_features = _CTX * embedding_dim  # 120

    # Deterministic synthetic parameters (shapes match the PyTorch module; fc weights
    # are pre-transposed so the math is plain row-major x @ W + b).
    emb = jax.random.normal(k_emb, (vocab_size, embedding_dim), jnp.float32)
    bound1 = 1.0 / float(in_features) ** 0.5
    w1 = jax.random.uniform(k_w1, (in_features, hidden_size), jnp.float32, -bound1, bound1)
    b1 = jax.random.uniform(k_b1, (1, hidden_size), jnp.float32, -bound1, bound1)
    bound2 = 1.0 / float(hidden_size) ** 0.5
    w2 = jax.random.uniform(k_w2, (hidden_size, vocab_size), jnp.float32, -bound2, bound2)
    b2 = jax.random.uniform(k_b2, (1, vocab_size), jnp.float32, -bound2, bound2)

    # Input: (batch_size, order-1) token ids.
    x = jax.random.randint(k_x, (batch_size, _CTX), 0, vocab_size, jnp.int32)

    params = prepare_params(emb, w1, b1, w2, b2)
    probs = jax.block_until_ready(nnlm_forward(x, params))
    assert probs.shape == (batch_size, vocab_size)

    # Full-f32 reference (embedding -> fc1 -> tanh -> fc2 -> softmax); tolerance
    # covers the bf16 MXU operands.
    ref_embeds = emb[x].reshape(batch_size, -1)
    ref_f32 = jax.nn.softmax(jnp.tanh(ref_embeds @ w1 + b1) @ w2 + b2, axis=1)
    assert jnp.allclose(probs, ref_f32, atol=2e-3), "mismatch vs f32 JAX reference"

    # Exact-reciprocal softmax: rows normalize to f32 precision.
    assert jnp.allclose(jnp.sum(probs, axis=1), 1.0, atol=1e-4), "rows not normalized"

    print("KERNEL_OK")
</pallas_src>

<mosaic_0001>
module attributes {stable_mosaic.version = 11 : i64} {
  func.func @nnlm_kernel(%arg0: memref<16x4xi32, #tpu.memory_space<vmem>>, %arg1: memref<256x128xbf16, #tpu.memory_space<vmem>>, %arg2: memref<2x128xf32, #tpu.memory_space<vmem>>, %arg3: memref<128x128xbf16, #tpu.memory_space<vmem>>, %arg4: memref<16x128xf32, #tpu.memory_space<vmem>>) attributes {dimension_semantics = [], scalar_prefetch = 0 : i64, scratch_operands = 0 : i64, tpu.core_type = #tpu.core_type<tc>} {
    %0 = tpu.iota {dimensions = array<i32: 1>} : vector<16x256xi32>
    %c0 = arith.constant 0 : index
    %c0_0 = arith.constant 0 : index
    %1 = vector.load %arg0[%c0, %c0_0] : memref<16x4xi32, #tpu.memory_space<vmem>>, vector<16x1xi32>
    %2 = vector.broadcast %1 : vector<16x1xi32> to vector<16x256xi32>
    %3 = arith.cmpi eq, %0, %2 : vector<16x256xi32>
    %4 = arith.extui %3 : vector<16x256xi1> to vector<16x256xi32>
    %5 = arith.sitofp %4 : vector<16x256xi32> to vector<16x256xf32>
    %c0_1 = arith.constant 0 : index
    %c1 = arith.constant 1 : index
    %6 = vector.load %arg0[%c0_1, %c1] : memref<16x4xi32, #tpu.memory_space<vmem>>, vector<16x1xi32>
    %7 = vector.broadcast %6 : vector<16x1xi32> to vector<16x256xi32>
    %8 = arith.cmpi eq, %0, %7 : vector<16x256xi32>
    %9 = arith.extui %8 : vector<16x256xi1> to vector<16x256xi32>
    %10 = arith.sitofp %9 : vector<16x256xi32> to vector<16x256xf32>
    %11 = arith.addf %5, %10 : vector<16x256xf32>
    %c0_2 = arith.constant 0 : index
    %c2 = arith.constant 2 : index
    %12 = vector.load %arg0[%c0_2, %c2] : memref<16x4xi32, #tpu.memory_space<vmem>>, vector<16x1xi32>
    %13 = vector.broadcast %12 : vector<16x1xi32> to vector<16x256xi32>
    %14 = arith.cmpi eq, %0, %13 : vector<16x256xi32>
    %15 = arith.extui %14 : vector<16x256xi1> to vector<16x256xi32>
    %16 = arith.sitofp %15 : vector<16x256xi32> to vector<16x256xf32>
    %17 = arith.addf %11, %16 : vector<16x256xf32>
    %c0_3 = arith.constant 0 : index
    %c3 = arith.constant 3 : index
    %18 = vector.load %arg0[%c0_3, %c3] : memref<16x4xi32, #tpu.memory_space<vmem>>, vector<16x1xi32>
    %19 = vector.broadcast %18 : vector<16x1xi32> to vector<16x256xi32>
    %20 = arith.cmpi eq, %0, %19 : vector<16x256xi32>
    %21 = arith.extui %20 : vector<16x256xi1> to vector<16x256xi32>
    %22 = arith.sitofp %21 : vector<16x256xi32> to vector<16x256xf32>
    %23 = arith.addf %17, %22 : vector<16x256xf32>
    %24 = arith.truncf %23 : vector<16x256xf32> to vector<16x256xbf16>
    %c0_4 = arith.constant 0 : index
    %c0_5 = arith.constant 0 : index
    %25 = vector.load %arg1[%c0_4, %c0_5] : memref<256x128xbf16, #tpu.memory_space<vmem>>, vector<256x128xbf16>
    %cst = arith.constant dense<0.000000e+00> : vector<16x128xf32>
    %26 = tpu.matmul %24, %25, %cst {dimension_numbers = #tpu.dot_dimension_numbers<[1], [0], [0], [1], [0, 0, 1, 1], [], []>} : vector<16x256xbf16>, vector<256x128xbf16>, vector<16x128xf32> -> vector<16x128xf32>
    %c0_6 = arith.constant 0 : index
    %c0_7 = arith.constant 0 : index
    %27 = vector.load %arg2[%c0_6, %c0_7] : memref<2x128xf32, #tpu.memory_space<vmem>>, vector<1x128xf32>
    %28 = vector.broadcast %27 : vector<1x128xf32> to vector<16x128xf32>
    %29 = arith.addf %26, %28 : vector<16x128xf32>
    %30 = math.tanh %29 : vector<16x128xf32>
    %31 = arith.truncf %30 : vector<16x128xf32> to vector<16x128xbf16>
    %c0_8 = arith.constant 0 : index
    %c0_9 = arith.constant 0 : index
    %32 = vector.load %arg3[%c0_8, %c0_9] : memref<128x128xbf16, #tpu.memory_space<vmem>>, vector<128x128xbf16>
    %cst_10 = arith.constant dense<0.000000e+00> : vector<16x128xf32>
    %33 = tpu.matmul %31, %32, %cst_10 {dimension_numbers = #tpu.dot_dimension_numbers<[1], [0], [0], [1], [0, 0, 1, 1], [], []>} : vector<16x128xbf16>, vector<128x128xbf16>, vector<16x128xf32> -> vector<16x128xf32>
    %c1_11 = arith.constant 1 : index
    %c0_12 = arith.constant 0 : index
    %34 = vector.load %arg2[%c1_11, %c0_12] : memref<2x128xf32, #tpu.memory_space<vmem>>, vector<1x128xf32>
    %35 = vector.broadcast %34 : vector<1x128xf32> to vector<16x128xf32>
    %36 = arith.addf %33, %35 : vector<16x128xf32>
    %cst_13 = arith.constant dense<0xFF800000> : vector<16xf32>
    %37 = vector.multi_reduction <maximumf>, %36, %cst_13 [1] : vector<16x128xf32> to vector<16xf32>
    %38 = vector.shape_cast %37 : vector<16xf32> to vector<16x1xf32>
    %39 = vector.broadcast %38 : vector<16x1xf32> to vector<16x128xf32>
    %40 = arith.subf %36, %39 : vector<16x128xf32>
    %41 = math.exp %40 : vector<16x128xf32>
    %cst_14 = arith.constant dense<0.000000e+00> : vector<16xf32>
    %42 = vector.multi_reduction <add>, %41, %cst_14 [1] : vector<16x128xf32> to vector<16xf32>
    %43 = vector.shape_cast %42 : vector<16xf32> to vector<16x1xf32>
    %44 = tpu.reciprocal %43 : vector<16x1xf32> -> vector<16x1xf32>
    %45 = vector.broadcast %44 : vector<16x1xf32> to vector<16x128xf32>
    %46 = arith.mulf %41, %45 : vector<16x128xf32>
    %c0_15 = arith.constant 0 : index
    %c0_16 = arith.constant 0 : index
    %47 = vector.load %arg4[%c0_15, %c0_16] : memref<16x128xf32, #tpu.memory_space<vmem>>, vector<16x128xf32>
    tpu.vector_store %arg4[%c0_15, %c0_16], %46 {strides = array<i32>} : memref<16x128xf32, #tpu.memory_space<vmem>>, vector<16x128xf32>,
    return
  }
}

</mosaic_0001>

<bundles_post_ra>
// kernel: tpu_custom_call.1
= control target key start
LH: loop header
LB: loop body
LE: loop exit
PB: predicated region body
PF: predicated region fallthrough
CT: control target
= control target key end

     0   :  { %9 = vsyncpa [#allocation3], 0  ;;  %s751_s0 = inlined_call_operand.vmem [shape: s32[16,4], index: 0, kind: input, shape index: {}]   ;;  %s752_s1 = inlined_call_operand.hbm [shape: bf16[256,128], index: 1, kind: input, shape index: {}]   ;;  %s753_s2 = inlined_call_operand.vmem [shape: f32[2,128], index: 2, kind: input, shape index: {}]   ;;  %s754_s3 = inlined_call_operand.hbm [shape: bf16[128,128], index: 3, kind: input, shape index: {}]   ;;  %s755_s4 = inlined_call_operand.hbm [shape: f32[16,128], index: 4, kind: output, shape index: {}]  }
   0x1   :  { %10 = vsyncpa [#allocation6], 0 }
   0x2   :  { %11 = vsyncpa [#allocation4], 0  ;;  %s18_s17 = sshll.u32 %s752_s1, 4  ;;  %s693_s18 = smov [#allocation2]   ;;  %s19_s17 = int_to_ptr.hbm [resolvable:$true] %s18_s17 }
   0x3   :  { %s20_s19 = sshll.u32 %s693_s18, 4  ;;  %s33_s22 = sshll.u32 %s754_s3, 4  ;;  %s21_s19 = int_to_ptr.vmem [resolvable:$true] %s20_s19  ;;  %s34_s22 = int_to_ptr.hbm [resolvable:$true] %s33_s22 }
   0x4   :  { %s694_s23 = smov 64   ;;  %s695_s24 = smov 4  }
   0x5   :  { %26 = dma.hbm_to_vmem [thread:$0]  %s19_s17, 2048, %s21_s19, [#allocation3], %s694_s23, %s694_s23, %s695_s24  }
   0x6   :  { %s696_s25 = smov [#allocation5]  }
   0x7   :  { %s35_s26 = sshll.u32 %s696_s25, 4  ;;  %s36_s26 = int_to_ptr.vmem [resolvable:$true] %s35_s26 }
   0x8   :  { %41 = dma.hbm_to_vmem [thread:$0]  %s34_s22, 1024, %s36_s26, [#allocation6], %s694_s23, %s694_s23, %s695_s24  }
   0x9   :  { %687 = dma.done.wait [#allocation3], 2048  }
   0xa   :  { %688 = vsyncadd [#allocation3], 4294965248 }
   0xb   :  { %689 = dma.done.wait [#allocation6], 1024  }
   0xc   :  { %690 = vsyncadd [#allocation6], 4294966272  ;;  %v697_v0 = vmov 1   ;;  %v698_v1 = vmov 0   ;;  %v699_v2 = vmov 2   ;;  %v53_v3 = vld [vmem:[%s751_s0] sm:$0xff]  ;;  %v50_v23 = vlaneseq }
   0xd   :  { %597 = vset.pattern.permute.xlu1 %v697_v0  ;;  %596 = vset.pattern.permute.xlu0 %v698_v1  ;;  %v567_v4 = vld [vmem:[#allocation2 + $0x38] sm:$0xff]  ;;  %v566_v6 = vld [vmem:[#allocation2 + $0x30] sm:$0xff]  ;;  %v54_v8 = vld [vmem:[%s751_s0 + $0x8] sm:$0xff]  ;;  %v700_v9 = vmov 3   ;;  %v701_v31 = vmov 0.0   ;;  %s434_s9 = sshll.u32 %s755_s4, 4  ;;  %s435_s9 = int_to_ptr.hbm [resolvable:$true] %s434_s9 }
   0xe   :  { %598 = vset.pattern.permute.xlu2 %v699_v2  ;;  %74 = vperm.xlu1 %597, %v53_v3   ;;  %v575_v5 = vld [vmem:[#allocation2 + $0x78] sm:$0xff]  ;;  %v574_v7 = vld [vmem:[#allocation2 + $0x70] sm:$0xff]  ;;  %v565_v10 = vld [vmem:[#allocation2 + $0x28] sm:$0xff]  ;;  %v51_v25 = vand.u32 127, %v50_v23  ;;  %s703_s10 = smov 128   ;;  %s704_s11 = smov 8  }
   0xf   :  { %56 = vperm.xlu0 %596, %v53_v3   ;;  %96 = vperm.xlu2 %598, %v53_v3   ;;  %v573_v11 = vld [vmem:[#allocation2 + $0x68] sm:$0xff]  ;;  %v564_v12 = vld [vmem:[#allocation2 + $0x20] sm:$0xff]  ;;  %v563_v14 = vld [vmem:[#allocation2 + $0x18] sm:$0xff] }
  0x10   :  { %271 = vmatpush.bf16.msra.mxu0 %v567_v4  ;;  %285 = vmatpush.bf16.msra.mxu1 %v575_v5  ;;  %v572_v13 = vld [vmem:[#allocation2 + $0x60] sm:$0xff]  ;;  %v571_v15 = vld [vmem:[#allocation2 + $0x58] sm:$0xff]  ;;  %v562_v16 = vld [vmem:[#allocation2 + $0x10] sm:$0xff]  ;;  %v52_v30 = vadd.s32 128, %v51_v25 }
  0x11   :  { %v570_v17 = vld [vmem:[#allocation2 + $0x50] sm:$0xff]  ;;  %v561_v18 = vld [vmem:[#allocation2 + $0x8] sm:$0xff]  ;;  %v560_v20 = vld [vmem:[#allocation2] sm:$0xff] }
  0x12   :  { %v569_v19 = vld [vmem:[#allocation2 + $0x48] sm:$0xff]  ;;  %v568_v21 = vld [vmem:[#allocation2 + $0x40] sm:$0xff]  ;;  %v583_v22 = vld [vmem:[#allocation5 + $0x38] sm:$0xff] }
  0x13   :  { %368 = vmatpush.bf16.msra.mxu2 %v583_v22  ;;  %v582_v24 = vld [vmem:[#allocation5 + $0x30] sm:$0xff]  ;;  %v581_v26 = vld [vmem:[#allocation5 + $0x28] sm:$0xff]  ;;  %v579_v4 = vld [vmem:[#allocation5 + $0x18] sm:$0xff] }
  0x14   :  { %272 = vmatpush.bf16.msra.mxu0 %v566_v6  ;;  %286 = vmatpush.bf16.msra.mxu1 %v574_v7  ;;  %v578_v5 = vld [vmem:[#allocation5 + $0x10] sm:$0xff]  ;;  %v577_v6 = vld [vmem:[#allocation5 + $0x8] sm:$0xff]  ;;  %v576_v7 = vld [vmem:[#allocation5] sm:$0xff] }
  0x16   :  { %77 = vperm.xlu1 %597, %v54_v8  }
  0x17   :  { %59 = vperm.xlu0 %596, %v54_v8   ;;  %99 = vperm.xlu2 %598, %v54_v8  }
  0x18   :  { %273 = vmatpush.bf16.msra.mxu0 %v565_v10  ;;  %287 = vmatpush.bf16.msra.mxu1 %v573_v11 }
  0x19   :  { %369 = vmatpush.bf16.msra.mxu2 %v582_v24 }
  0x1c   :  { %274 = vmatpush.bf16.msra.mxu0 %v564_v12  ;;  %288 = vmatpush.bf16.msra.mxu1 %v572_v13 }
  0x1d   :  { %370 = vmatpush.bf16.msra.mxu2 %v581_v26 }
  0x1e   :  { %600 = vset.pattern.permute.xlu1 %v700_v9 }
  0x1f   :  { %599 = vset.pattern.permute.xlu0 %v700_v9  ;;  %121 = vperm.xlu1 %600, %v54_v8   ;;  %v601_v8 = vld [vmem:[%s753_s2] ss:$0 sm:$0xff] }
  0x20   :  { %118 = vperm.xlu0 %599, %v53_v3   ;;  %275 = vmatpush.bf16.msra.mxu0 %v563_v14  ;;  %v580_v3 = vld [vmem:[#allocation5 + $0x20] sm:$0xff] }
  0x21   :  { %289 = vmatpush.bf16.msra.mxu1 %v571_v15  ;;  %371 = vmatpush.bf16.msra.mxu2 %v580_v3 }
  0x24   :  { %276 = vmatpush.bf16.msra.mxu0 %v562_v16 }
  0x25   :  { %290 = vmatpush.bf16.msra.mxu1 %v570_v17  ;;  %372 = vmatpush.bf16.msra.mxu2 %v579_v4 }
  0x28   :  { %277 = vmatpush.bf16.msra.mxu0 %v561_v18 }
  0x29   :  { %291 = vmatpush.bf16.msra.mxu1 %v569_v19  ;;  %373 = vmatpush.bf16.msra.mxu2 %v578_v5 }
  0x2c   :  { %278 = vmatpush.bf16.msra.mxu0 %v560_v20  ;;  %v602_v20 = vld [vmem:[%s753_s2 + $0x1] ss:$0 sm:$0xff]  ;;  %s702_s2 = smov [#allocation7]  }
  0x2d   :  { %292 = vmatpush.bf16.msra.mxu1 %v568_v21  ;;  %374 = vmatpush.bf16.msra.mxu2 %v577_v6  ;;  %s432_s6 = sshll.u32 %s702_s2, 4  ;;  %s433_s6 = int_to_ptr.vmem [resolvable:$true] %s432_s6 }
  0x31   :  { %375 = vmatpush.bf16.msra.mxu2 %v576_v7 }
  0x69   :  { %v97_v27 = vpop.permute.xlu2 %96 }
  0x6a   :  { %vm101_vm8 = vcmp.eq.s32.totalorder %v51_v25, %v97_v27  ;;  %vm102_vm9 = vcmp.eq.s32.totalorder %v52_v30, %v97_v27 }
  0x6b   :  { %v456_v47 = vsel %vm101_vm8, 1.0, %v701_v31  ;;  %v457_v48 = vsel %vm102_vm9, 1.0, %v701_v31 }
  0x71   :  { %v100_v38 = vpop.permute.xlu2 %99 }
  0x72   :  { %vm103_vm10 = vcmp.eq.s32.totalorder %v51_v25, %v100_v38  ;;  %vm104_vm11 = vcmp.eq.s32.totalorder %v52_v30, %v100_v38 }
  0x73   :  { %v458_v49 = vsel %vm103_vm10, 1.0, %v701_v31  ;;  %v459_v50 = vsel %vm104_vm11, 1.0, %v701_v31 }
  0x80   :  { %v75_v28 = vpop.permute.xlu1 %74 }
  0x81   :  { %v57_v29 = vpop.permute.xlu0 %56  ;;  %vm79_vm0 = vcmp.eq.s32.totalorder %v51_v25, %v75_v28  ;;  %vm80_vm1 = vcmp.eq.s32.totalorder %v52_v30, %v75_v28 }
  0x82   :  { %vm61_vm2 = vcmp.eq.s32.totalorder %v51_v25, %v57_v29  ;;  %vm62_vm3 = vcmp.eq.s32.totalorder %v52_v30, %v57_v29  ;;  %v452_v32 = vsel %vm79_vm0, 1.0, %v701_v31  ;;  %v453_v33 = vsel %vm80_vm1, 1.0, %v701_v31 }
  0x83   :  { %v448_v34 = vsel %vm61_vm2, 1.0, %v701_v31  ;;  %v449_v35 = vsel %vm62_vm3, 1.0, %v701_v31 }
  0x84   :  { %v91_v43 = vadd.f32 %v452_v32, %v448_v34  ;;  %v92_v44 = vadd.f32 %v453_v33, %v449_v35 }
  0x86   :  { %v113_v53 = vadd.f32 %v456_v47, %v91_v43  ;;  %v114_v55 = vadd.f32 %v457_v48, %v92_v44 }
  0x88   :  { %v78_v36 = vpop.permute.xlu1 %77 }
  0x89   :  { %v60_v37 = vpop.permute.xlu0 %59  ;;  %vm81_vm4 = vcmp.eq.s32.totalorder %v51_v25, %v78_v36  ;;  %vm82_vm5 = vcmp.eq.s32.totalorder %v52_v30, %v78_v36 }
  0x8a   :  { %vm63_vm6 = vcmp.eq.s32.totalorder %v51_v25, %v60_v37  ;;  %vm64_vm7 = vcmp.eq.s32.totalorder %v52_v30, %v60_v37  ;;  %v454_v39 = vsel %vm81_vm4, 1.0, %v701_v31  ;;  %v455_v40 = vsel %vm82_vm5, 1.0, %v701_v31 }
  0x8b   :  { %v450_v41 = vsel %vm63_vm6, 1.0, %v701_v31  ;;  %v451_v42 = vsel %vm64_vm7, 1.0, %v701_v31 }
  0x8c   :  { %v93_v45 = vadd.f32 %v454_v39, %v450_v41  ;;  %v94_v46 = vadd.f32 %v455_v40, %v451_v42 }
  0x8e   :  { %v115_v54 = vadd.f32 %v458_v49, %v93_v45  ;;  %v116_v56 = vadd.f32 %v459_v50, %v94_v46 }
  0x91   :  { %v122_v51 = vpop.permute.xlu1 %121 }
  0x92   :  { %v119_v52 = vpop.permute.xlu0 %118  ;;  %vm125_vm12 = vcmp.eq.s32.totalorder %v51_v25, %v122_v51  ;;  %vm126_vm13 = vcmp.eq.s32.totalorder %v52_v30, %v122_v51 }
  0x93   :  { %vm123_vm14 = vcmp.eq.s32.totalorder %v51_v25, %v119_v52  ;;  %vm124_vm15 = vcmp.eq.s32.totalorder %v52_v30, %v119_v52  ;;  %v462_v57 = vsel %vm125_vm12, 1.0, %v701_v31  ;;  %v463_v58 = vsel %vm126_vm13, 1.0, %v701_v31 }
  0x94   :  { %v460_v59 = vsel %vm123_vm14, 1.0, %v701_v31  ;;  %v461_v60 = vsel %vm124_vm15, 1.0, %v701_v31  ;;  %v137_v62 = vadd.f32 %v462_v57, %v115_v54  ;;  %v138_v0 = vadd.f32 %v463_v58, %v116_v56 }
  0x95   :  { %v135_v61 = vadd.f32 %v460_v59, %v113_v53  ;;  %v136_v63 = vadd.f32 %v461_v60, %v114_v55 }
  0x97   :  { %v139_v1 = vpack.c.bf16 %v137_v62, %v135_v61  ;;  %v140_v2 = vpack.c.bf16 %v138_v0, %v136_v63 }
  0x99   :  { %279 = vmatmul.bf16.vlgmr.msra.gmra.mxu0 %v139_v1  ;;  %293 = vmatmul.bf16.vlgmr.msra.gmra.mxu1 %v140_v2 }
 0x116   :  { %v280_v9 = vpop.f32.mrf.mxu0  ;;  %v294_v10 = vpop.f32.mrf.mxu1 }
 0x117   :  { %v281_v11 = vadd.f32 %v601_v8, %v280_v9 }
 0x119   :  { %v295_v12 = vadd.f32 %v294_v10, %v281_v11 }
 0x11b   :  { %603 = vtanh.f32 %v295_v12 }
 0x11e   :  { %v282_v13 = vpop.f32.mrf.mxu0  ;;  %v296_v15 = vpop.f32.mrf.mxu1 }
 0x11f   :  { %v283_v14 = vadd.f32 %v601_v8, %v282_v13 }
 0x121   :  { %v297_v16 = vadd.f32 %v296_v15, %v283_v14  ;;  %v604_v17 = vpop.eup %603 }
 0x123   :  { %605 = vtanh.f32 %v297_v16 }
 0x129   :  { %v606_v18 = vpop.eup %605 }
 0x12a   :  { %v301_v19 = vpack.c.bf16 %v606_v18, %v604_v17 }
 0x12c   :  { %376 = vmatmul.bf16.vlgmr.msra.gmra.mxu2 %v301_v19 }
 0x1af   :  { %v377_v21 = vpop.f32.mrf.mxu2 }
 0x1b0   :  { %v378_v22 = vadd.f32 %v602_v20, %v377_v21 }
 0x1b2   :  { %382 = vmax.xlane.f32.xlu2 %v378_v22 }
 0x1b7   :  { %v379_v23 = vpop.f32.mrf.mxu2 }
 0x1b8   :  { %v380_v24 = vadd.f32 %v602_v20, %v379_v23 }
 0x1ba   :  { %384 = vmax.xlane.f32.xlu1 %v380_v24 }
 0x225   :  { %v383_v25 = vpop.xlane.xlu2 %382 }
 0x226   :  { %v386_v26 = vsub.f32 %v378_v22, %v383_v25 }
 0x228   :  { %v388_v27 = vmul.f32 1.442695, %v386_v26 }
 0x22a   :  { %607 = vpow2.f32 %v388_v27 }
 0x22d   :  { %v385_v28 = vpop.xlane.xlu1 %384 }
 0x22e   :  { %v387_v29 = vsub.f32 %v380_v24, %v385_v28 }
 0x230   :  { %v608_v30 = vpop.eup %607  ;;  %v390_v31 = vmul.f32 1.442695, %v387_v29 }
 0x231   :  { %392 = vadd.xlane.f32.xlu0 %v608_v30 }
 0x232   :  { %609 = vpow2.f32 %v390_v31 }
 0x238   :  { %v610_v32 = vpop.eup %609 }
 0x239   :  { %394 = vadd.xlane.f32.xlu2 %v610_v32 }
 0x2a4   :  { %v393_v33 = vpop.xlane.xlu0 %392 }
 0x2a5   :  { %611 = vrcp.f32 %v393_v33  ;;  %v407_v38 = vand.u32 2147483648, %v393_v33  ;;  %v405_v40 = vand.u32 2147483647, %v393_v33  ;;  %vm401_vm1 = vweird.f32 %v393_v33 }
 0x2a7   :  { %v408_v43 = vor.u32 1.1754944e-38, %v407_v38  ;;  %vm406_vm3 = vcmp.eq.f32.partialorder %v405_v40, 8.507059e+37 }
 0x2ab   :  { %v612_v34 = vpop.eup %611 }
 0x2ac   :  { %v397_v35 = vmul.f32 %v612_v34, %v393_v33  ;;  %v395_v36 = vpop.xlane.xlu2 %394  ;;  %vm402_vm0 = vweird.f32 %v612_v34 }
 0x2ad   :  { %613 = vrcp.f32 %v395_v36  ;;  %vm403_vm2 = vmor %vm401_vm1, %vm402_vm0  ;;  %v421_v49 = vand.u32 2147483648, %v395_v36  ;;  %v419_v51 = vand.u32 2147483647, %v395_v36  ;;  %vm415_vm5 = vweird.f32 %v395_v36 }
 0x2ae   :  { %v398_v37 = vsub.f32 1.0, %v397_v35 }
 0x2af   :  { %v422_v53 = vor.u32 1.1754944e-38, %v421_v49  ;;  %vm420_vm7 = vcmp.eq.f32.partialorder %v419_v51, 8.507059e+37 }
 0x2b0   :  { %v399_v39 = vmul.f32 %v612_v34, %v398_v37 }
 0x2b2   :  { %v400_v41 = vadd.f32 %v612_v34, %v399_v39 }
 0x2b3   :  { %v614_v42 = vpop.eup %613 }
 0x2b4   :  { %v404_v44 = vsel %vm403_vm2, %v612_v34, %v400_v41  ;;  %v411_v45 = vmul.f32 %v614_v42, %v395_v36  ;;  %vm416_vm4 = vweird.f32 %v614_v42 }
 0x2b5   :  { %v409_v46 = vsel %vm406_vm3, %v408_v43, %v404_v44  ;;  %vm417_vm6 = vmor %vm415_vm5, %vm416_vm4 }
 0x2b6   :  { %v424_v47 = vmul.f32 %v608_v30, %v409_v46  ;;  %v412_v48 = vsub.f32 1.0, %v411_v45 }
 0x2b8   :  { %426 = vst [vmem:[#allocation7] sm:$0xff] %v424_v47  ;;  %v413_v50 = vmul.f32 %v614_v42, %v412_v48 }
 0x2ba   :  { %v414_v52 = vadd.f32 %v614_v42, %v413_v50 }
 0x2bc   :  { %v418_v54 = vsel %vm417_vm6, %v614_v42, %v414_v52 }
 0x2bd   :  { %v423_v55 = vsel %vm420_vm7, %v422_v53, %v418_v54 }
 0x2be   :  { %v425_v56 = vmul.f32 %v610_v32, %v423_v55 }
 0x2c0   :  { %427 = vst [vmem:[#allocation7 + $0x8] sm:$0xff] %v425_v56 }
 0x2c1   :  { %440 = dma.vmem_to_hbm [thread:$0]  %s433_s6, 256, %s435_s9, [#allocation4], %s703_s10, %s703_s10, %s704_s11  }
 0x2c2   :  { %691 = dma.done.wait [#allocation4], 256  }
 0x2c3   :  { %692 = vsyncadd [#allocation4], 4294967040 }
 0x2c4   :  { %445 = vsyncpa [#allocation3], 1 }
 0x2c5   :  { %446 = vsyncpa [#allocation6], 1 }
 0x2c6   :  { %447 = vsyncpa [#allocation4], 1 }

</bundles_post_ra>
